<compile_context>
chip_gen: v6e
topology: v6e:2x2x1
jax: 0.10.0
libtpu: 0.0.40
codegen_flags: <defaults>
</compile_context>

<pallas_src>
import math

import jax
import jax.numpy as jnp
from jax.experimental import pallas as pl
from jax.experimental.pallas import tpu as pltpu

# ---------------- configuration (consistent with the module) ------------------
STATE_DIM = 16
HIDDEN_DIM = 32
NUM_AGENTS = 4
NUM_HEADS = 4
HEAD_DIM = HIDDEN_DIM // NUM_HEADS
FF_DIM = HIDDEN_DIM * 4          # == 128
BATCH = 8
LN_EPS = 1e-5

LANE = 128                        # lane width / padded out-dim of weight blocks

# weight slab layout: natural K rows per block, out-dim zero-padded to 128 lanes
#   0: w_in  [16,128]   1: w_attn(folded) [32,128]   2: wf1 [32,128]
#   3: wf2  [128,128]   4: wv1(LN2 folded)[32,128]   5: wv2 [32,128]   6: wv3 [32,128]
W_ROWS = (STATE_DIM, HIDDEN_DIM, HIDDEN_DIM, FF_DIM, HIDDEN_DIM, HIDDEN_DIM, HIDDEN_DIM)
W_OFFS = tuple(sum(W_ROWS[:i]) for i in range(len(W_ROWS)))   # (0,16,48,80,208,240,272)
W_TOTAL = sum(W_ROWS)                                          # 304
BIAS_ROWS = 16                    # 11 used rows, padded to a sublane multiple

TM_CAP = 1024                     # max rows per grid step (amortize step overhead)
ROW_ALIGN = 16                    # bf16 sublane tile


# ---------------- the Pallas kernel -------------------------------------------
def critic_kernel(s_ref, w_ref, b_ref, out_ref):
    inv_h = 1.0 / HIDDEN_DIM

    def w(i):                                    # bf16 [K_i, 128] weight block (static slice)
        r0 = W_OFFS[i]
        return w_ref[r0:r0 + W_ROWS[i], :]

    def b(i):                                    # f32 [1, 128] bias / gamma / beta row
        return b_ref[i:i + 1, :]

    def lin(x_bf16, wi, bi):                     # bf16 MXU matmul, f32 accumulate + f32 bias
        return jnp.dot(x_bf16, w(wi), preferred_element_type=jnp.float32) + b(bi)

    def narrow(x_f32):                           # drop (exactly-zero) pad lanes, cast for MXU
        return x_f32[:, :HIDDEN_DIM].astype(jnp.bfloat16)

    def ln_stats(x):                             # single-pass mean / inv-std over 32 valid lanes
        mu = jnp.sum(x, axis=-1, keepdims=True) * inv_h
        ex2 = jnp.sum(x * x, axis=-1, keepdims=True) * inv_h
        return mu, jax.lax.rsqrt(ex2 - mu * mu + LN_EPS)

    def ln(x, gi, bi):                           # gamma is zero in pad lanes -> pads stay zero
        mu, rstd = ln_stats(x)
        return (x - mu) * rstd * b(gi) + b(bi)

    s = s_ref[...]                               # bf16 [TM, 16]

    # input_layer: Linear -> ReLU -> LayerNorm
    x = ln(jnp.maximum(lin(s, 0, 0), 0.0), 1, 2)

    # 1-token self-attention (softmax == 1): attended = x @ (Wv^T Wo^T) + (bv Wo^T + bo)
    att = lin(narrow(x), 1, 3)
    x = ln(x + att, 4, 5)                        # residual + layer_norm1

    # feed-forward: Linear -> ReLU -> Linear (dropouts are identity in eval)
    f = jnp.maximum(lin(narrow(x), 2, 6), 0.0)   # [TM, 128], all lanes valid
    z = x + lin(f.astype(jnp.bfloat16), 3, 7)    # residual
    mu, rstd = ln_stats(z)                       # layer_norm2, affine folded into wv1/bv1
    xh = (z - mu) * rstd                         # pad lanes garbage; sliced off by narrow()

    # value_net: Linear -> ReLU -> Linear -> ReLU -> Linear
    h1 = jnp.maximum(lin(narrow(xh), 4, 8), 0.0)
    h2 = jnp.maximum(lin(narrow(h1), 5, 9), 0.0)
    v = lin(narrow(h2), 6, 10)                   # [TM, 128], valid values in lanes 0:4
    out_ref[...] = v[:, :NUM_AGENTS]


# ---------------- parameter packing (hoisted, one-time cost) -------------------
def pack_params(p):
    """Fold / transpose / pad PyTorch-layout params into a bf16 weight slab + f32 bias slab."""
    f32 = jnp.float32

    # attention fold (seq_len == 1 -> softmax == 1, head split/merge is identity):
    #   attended = x @ (Wv^T Wo^T) + (bv Wo^T + bo)
    w_attn = p["wv"].T @ p["wo"].T                           # [32, 32]  (in, out)
    b_attn = p["bv"] @ p["wo"].T + p["bo"]                   # [32]

    # layer_norm2 affine folded into value_net[0]:
    #   relu(LN2(z) Wv1^T + bv1) = relu(zhat (diag(g2) Wv1^T) + (be2 Wv1^T + bv1))
    w_v1 = p["g2"][:, None] * p["wv1"].T                     # [32, 32]
    b_v1 = p["be2"] @ p["wv1"].T + p["bv1"]                  # [32]

    w_blocks = [p["w_in"].T, w_attn, p["wf1"].T, p["wf2"].T, w_v1, p["wv2"].T, p["wv3"].T]

    def pad_cols(wt, rows):
        blk = jnp.zeros((rows, LANE), f32)
        return blk.at[:, : wt.shape[1]].set(wt.astype(f32))

    w_slab = jnp.concatenate(
        [pad_cols(wt, rows) for wt, rows in zip(w_blocks, W_ROWS)], axis=0
    ).astype(jnp.bfloat16)                                   # [304, 128] bf16, ~76 KiB

    b_rows = [p["b_in"], p["g0"], p["be0"], b_attn, p["g1"], p["be1"],
              p["bf1"], p["bf2"], b_v1, p["bv2"], p["bv3"]]

    def pad_row(v):
        r = jnp.zeros((LANE,), f32)
        return r.at[: v.shape[0]].set(v.astype(f32))

    rows = [pad_row(v) for v in b_rows]
    rows += [jnp.zeros((LANE,), f32)] * (BIAS_ROWS - len(rows))
    b_slab = jnp.stack(rows, axis=0)                         # [16, 128] f32
    return w_slab, b_slab


# ---------------- tiling helpers ----------------------------------------------
def _round_up(x, m):
    return ((x + m - 1) // m) * m


def _cdiv(a, b):
    return -(-a // b)


def _choose_tiling(batch):
    n_tiles = max(1, _cdiv(batch, TM_CAP))
    if batch >= 256:
        n_tiles = max(n_tiles, 2)        # >= 2 grid steps so both v7x TCs get work
    tm = _round_up(_cdiv(batch, n_tiles), ROW_ALIGN)
    return tm, n_tiles


def _resident_spec(shape):
    """Constant-index BlockSpec; single-buffered when pipeline_mode is available."""
    index_map = lambda i: (0,) * len(shape)
    buffered = getattr(pl, "Buffered", None)
    if buffered is not None:
        try:
            return pl.BlockSpec(shape, index_map, pipeline_mode=buffered(1))
        except TypeError:
            pass
    return pl.BlockSpec(shape, index_map)


# ---------------- wrapper -------------------------------------------------------
def centralized_critic_forward(state, w_slab, b_slab):
    """Forward pass. w_slab / b_slab come from pack_params (hoisted / cached)."""
    b = state.shape[0]
    tm, n_tiles = _choose_tiling(b)
    bp = tm * n_tiles

    # narrow bf16 input: [bp, STATE_DIM]; no 128-lane padded slab in HBM
    x = jnp.zeros((bp, STATE_DIM), jnp.bfloat16).at[:b].set(state.astype(jnp.bfloat16))

    out = pl.pallas_call(
        critic_kernel,
        out_shape=jax.ShapeDtypeStruct((bp, NUM_AGENTS), jnp.float32),
        grid_spec=pltpu.PrefetchScalarGridSpec(
            num_scalar_prefetch=0,
            grid=(n_tiles,),
            in_specs=[
                pl.BlockSpec((tm, STATE_DIM), lambda i: (i, 0)),   # state row tile
                _resident_spec((W_TOTAL, LANE)),                   # bf16 weight slab
                _resident_spec((BIAS_ROWS, LANE)),                 # f32 bias/gamma/beta slab
            ],
            out_specs=pl.BlockSpec((tm, NUM_AGENTS), lambda i: (i, 0)),
        ),
        compiler_params=pltpu.CompilerParams(
            dimension_semantics=("parallel",)),
    )(x, w_slab, b_slab)

    return out[:b]


# ---------------- deterministic parameter construction (PyTorch layout) --------
def _orthogonal(key, shape, gain):
    rows, cols = shape
    n = max(rows, cols)
    a = jax.random.normal(key, (n, n), dtype=jnp.float32)
    qm, rm = jnp.linalg.qr(a)
    qm = qm * jnp.sign(jnp.diag(rm))
    return (gain * qm[:rows, :cols]).astype(jnp.float32)


def make_params(key):
    gain = math.sqrt(2.0)
    keys = jax.random.split(key, 16)
    z = lambda n: jnp.zeros((n,), jnp.float32)
    o = lambda n: jnp.ones((n,), jnp.float32)
    return {
        # input_layer
        "w_in": _orthogonal(keys[0], (HIDDEN_DIM, STATE_DIM), gain), "b_in": z(HIDDEN_DIM),
        "g0": o(HIDDEN_DIM), "be0": z(HIDDEN_DIM),
        # attention
        "wq": _orthogonal(keys[1], (HIDDEN_DIM, HIDDEN_DIM), gain), "bq": z(HIDDEN_DIM),
        "wk": _orthogonal(keys[2], (HIDDEN_DIM, HIDDEN_DIM), gain), "bk": z(HIDDEN_DIM),
        "wv": _orthogonal(keys[3], (HIDDEN_DIM, HIDDEN_DIM), gain), "bv": z(HIDDEN_DIM),
        "wo": _orthogonal(keys[4], (HIDDEN_DIM, HIDDEN_DIM), gain), "bo": z(HIDDEN_DIM),
        "g1": o(HIDDEN_DIM), "be1": z(HIDDEN_DIM),
        # feed-forward
        "wf1": _orthogonal(keys[5], (FF_DIM, HIDDEN_DIM), gain), "bf1": z(FF_DIM),
        "wf2": _orthogonal(keys[6], (HIDDEN_DIM, FF_DIM), gain), "bf2": z(HIDDEN_DIM),
        "g2": o(HIDDEN_DIM), "be2": z(HIDDEN_DIM),
        # value_net
        "wv1": _orthogonal(keys[7], (HIDDEN_DIM, HIDDEN_DIM), gain), "bv1": z(HIDDEN_DIM),
        "wv2": _orthogonal(keys[8], (HIDDEN_DIM, HIDDEN_DIM), gain), "bv2": z(HIDDEN_DIM),
        "wv3": _orthogonal(keys[9], (NUM_AGENTS, HIDDEN_DIM), gain), "bv3": z(NUM_AGENTS),
    }


# ---------------- pure-JAX faithful reference (full attention math) ------------
def reference_forward(state, p):
    relu = lambda x: jnp.maximum(x, 0.0)
    lin = lambda x, w, b: x @ w.T + b

    def ln(x, g, b):
        mu = x.mean(-1, keepdims=True)
        var = ((x - mu) ** 2).mean(-1, keepdims=True)
        return (x - mu) * jax.lax.rsqrt(var + LN_EPS) * g + b

    x = ln(relu(lin(state, p["w_in"], p["b_in"])), p["g0"], p["be0"])
    bsz = x.shape[0]
    xs = x[:, None, :]                                             # [B, 1, H] (unsqueeze)

    q = lin(xs, p["wq"], p["bq"])
    k = lin(xs, p["wk"], p["bk"])
    v = lin(xs, p["wv"], p["bv"])

    def split(t):
        return t.reshape(bsz, 1, NUM_HEADS, HEAD_DIM).transpose(0, 2, 1, 3)

    Q, K, V = split(q), split(k), split(v)
    scores = (Q @ K.transpose(0, 1, 3, 2)) / math.sqrt(HEAD_DIM)    # [B, nh, 1, 1]
    attn = jax.nn.softmax(scores, axis=-1)
    o = (attn @ V).transpose(0, 2, 1, 3).reshape(bsz, 1, HIDDEN_DIM)
    attended = lin(o, p["wo"], p["bo"])

    xs = ln(xs + attended, p["g1"], p["be1"])
    ff = lin(relu(lin(xs, p["wf1"], p["bf1"])), p["wf2"], p["bf2"])
    xs = ln(xs + ff, p["g2"], p["be2"])
    x = xs[:, 0, :]                                                 # squeeze(1)

    h1 = relu(lin(x, p["wv1"], p["bv1"]))
    h2 = relu(lin(h1, p["wv2"], p["bv2"]))
    return lin(h2, p["wv3"], p["bv3"])


if __name__ == "__main__":
    key = jax.random.PRNGKey(0)
    k_state, k_params = jax.random.split(key)
    state = jax.random.normal(k_state, (BATCH, STATE_DIM), dtype=jnp.float32)
    params = make_params(k_params)

    # pack once (hoisted out of the per-call forward path), then run the jitted forward
    w_slab, b_slab = pack_params(params)
    forward = jax.jit(centralized_critic_forward)
    values = jax.block_until_ready(forward(state, w_slab, b_slab))

    ref = reference_forward(state, params)
    assert values.shape == (BATCH, NUM_AGENTS)
    # bf16 MXU inputs (per perf review) -> looser tolerance than the pure-f32 path
    assert jnp.allclose(values, ref, atol=1e-1, rtol=1e-1), float(
        jnp.max(jnp.abs(values - ref)))
    print("KERNEL_OK")
</pallas_src>

<mosaic_0001>
module attributes {stable_mosaic.version = 11 : i64} {
  func.func @critic_kernel(%arg0: i32, %arg1: memref<16x16xbf16, #tpu.memory_space<vmem>>, %arg2: memref<304x128xbf16, #tpu.memory_space<vmem>>, %arg3: memref<16x128xf32, #tpu.memory_space<vmem>>, %arg4: memref<16x4xf32, #tpu.memory_space<vmem>>) attributes {dimension_semantics = [#tpu.dimension_semantics<parallel>], iteration_bounds = array<i64: 1>, scalar_prefetch = 0 : i64, scratch_operands = 0 : i64, tpu.core_type = #tpu.core_type<tc>, window_params = [{transform_indices = @transform_0, window_bounds = array<i64: 16, 16>}, {pipeline_mode = #tpu.pipeline_mode<synchronous>, transform_indices = @transform_1, window_bounds = array<i64: 304, 128>}, {pipeline_mode = #tpu.pipeline_mode<synchronous>, transform_indices = @transform_2, window_bounds = array<i64: 16, 128>}, {transform_indices = @transform_3, window_bounds = array<i64: 16, 4>}]} {
    %c0 = arith.constant 0 : index
    %c0_0 = arith.constant 0 : index
    %0 = vector.load %arg1[%c0, %c0_0] : memref<16x16xbf16, #tpu.memory_space<vmem>>, vector<16x16xbf16>
    %c0_1 = arith.constant 0 : index
    %c0_2 = arith.constant 0 : index
    %1 = vector.load %arg2[%c0_1, %c0_2] : memref<304x128xbf16, #tpu.memory_space<vmem>>, vector<16x128xbf16>
    %cst = arith.constant dense<0.000000e+00> : vector<16x128xf32>
    %2 = tpu.matmul %0, %1, %cst {dimension_numbers = #tpu.dot_dimension_numbers<[1], [0], [0], [1], [0, 0, 1, 1], [], []>} : vector<16x16xbf16>, vector<16x128xbf16>, vector<16x128xf32> -> vector<16x128xf32>
    %c0_3 = arith.constant 0 : index
    %c0_4 = arith.constant 0 : index
    %3 = vector.load %arg3[%c0_3, %c0_4] : memref<16x128xf32, #tpu.memory_space<vmem>>, vector<1x128xf32>
    %4 = vector.broadcast %3 : vector<1x128xf32> to vector<16x128xf32>
    %5 = arith.addf %2, %4 : vector<16x128xf32>
    %cst_5 = arith.constant 0.000000e+00 : f32
    %6 = vector.broadcast %cst_5 : f32 to vector<16x128xf32>
    %7 = arith.maximumf %5, %6 : vector<16x128xf32>
    %cst_6 = arith.constant dense<0.000000e+00> : vector<16xf32>
    %8 = vector.multi_reduction <add>, %7, %cst_6 [1] : vector<16x128xf32> to vector<16xf32>
    %9 = vector.shape_cast %8 : vector<16xf32> to vector<16x1xf32>
    %cst_7 = arith.constant 3.125000e-02 : f32
    %10 = vector.broadcast %cst_7 : f32 to vector<16x1xf32>
    %11 = arith.mulf %9, %10 : vector<16x1xf32>
    %12 = arith.mulf %7, %7 : vector<16x128xf32>
    %cst_8 = arith.constant dense<0.000000e+00> : vector<16xf32>
    %13 = vector.multi_reduction <add>, %12, %cst_8 [1] : vector<16x128xf32> to vector<16xf32>
    %14 = vector.shape_cast %13 : vector<16xf32> to vector<16x1xf32>
    %cst_9 = arith.constant 3.125000e-02 : f32
    %15 = vector.broadcast %cst_9 : f32 to vector<16x1xf32>
    %16 = arith.mulf %14, %15 : vector<16x1xf32>
    %17 = arith.mulf %11, %11 : vector<16x1xf32>
    %18 = arith.subf %16, %17 : vector<16x1xf32>
    %cst_10 = arith.constant 9.99999974E-6 : f32
    %19 = vector.broadcast %cst_10 : f32 to vector<16x1xf32>
    %20 = arith.addf %18, %19 : vector<16x1xf32>
    %21 = math.rsqrt %20 : vector<16x1xf32>
    %22 = vector.broadcast %11 : vector<16x1xf32> to vector<16x128xf32>
    %23 = arith.subf %7, %22 : vector<16x128xf32>
    %24 = vector.broadcast %21 : vector<16x1xf32> to vector<16x128xf32>
    %25 = arith.mulf %23, %24 : vector<16x128xf32>
    %c1 = arith.constant 1 : index
    %c0_11 = arith.constant 0 : index
    %26 = vector.load %arg3[%c1, %c0_11] : memref<16x128xf32, #tpu.memory_space<vmem>>, vector<1x128xf32>
    %27 = vector.broadcast %26 : vector<1x128xf32> to vector<16x128xf32>
    %28 = arith.mulf %25, %27 : vector<16x128xf32>
    %c2 = arith.constant 2 : index
    %c0_12 = arith.constant 0 : index
    %29 = vector.load %arg3[%c2, %c0_12] : memref<16x128xf32, #tpu.memory_space<vmem>>, vector<1x128xf32>
    %30 = vector.broadcast %29 : vector<1x128xf32> to vector<16x128xf32>
    %31 = arith.addf %28, %30 : vector<16x128xf32>
    %32 = vector.extract_strided_slice %31 {offsets = [0, 0], sizes = [16, 32], strides = [1, 1]} : vector<16x128xf32> to vector<16x32xf32>
    %33 = arith.truncf %32 : vector<16x32xf32> to vector<16x32xbf16>
    %c16 = arith.constant 16 : index
    %c0_13 = arith.constant 0 : index
    %34 = vector.load %arg2[%c16, %c0_13] : memref<304x128xbf16, #tpu.memory_space<vmem>>, vector<32x128xbf16>
    %cst_14 = arith.constant dense<0.000000e+00> : vector<16x128xf32>
    %35 = tpu.matmul %33, %34, %cst_14 {dimension_numbers = #tpu.dot_dimension_numbers<[1], [0], [0], [1], [0, 0, 1, 1], [], []>} : vector<16x32xbf16>, vector<32x128xbf16>, vector<16x128xf32> -> vector<16x128xf32>
    %c3 = arith.constant 3 : index
    %c0_15 = arith.constant 0 : index
    %36 = vector.load %arg3[%c3, %c0_15] : memref<16x128xf32, #tpu.memory_space<vmem>>, vector<1x128xf32>
    %37 = vector.broadcast %36 : vector<1x128xf32> to vector<16x128xf32>
    %38 = arith.addf %35, %37 : vector<16x128xf32>
    %39 = arith.addf %31, %38 : vector<16x128xf32>
    %cst_16 = arith.constant dense<0.000000e+00> : vector<16xf32>
    %40 = vector.multi_reduction <add>, %39, %cst_16 [1] : vector<16x128xf32> to vector<16xf32>
    %41 = vector.shape_cast %40 : vector<16xf32> to vector<16x1xf32>
    %cst_17 = arith.constant 3.125000e-02 : f32
    %42 = vector.broadcast %cst_17 : f32 to vector<16x1xf32>
    %43 = arith.mulf %41, %42 : vector<16x1xf32>
    %44 = arith.mulf %39, %39 : vector<16x128xf32>
    %cst_18 = arith.constant dense<0.000000e+00> : vector<16xf32>
    %45 = vector.multi_reduction <add>, %44, %cst_18 [1] : vector<16x128xf32> to vector<16xf32>
    %46 = vector.shape_cast %45 : vector<16xf32> to vector<16x1xf32>
    %cst_19 = arith.constant 3.125000e-02 : f32
    %47 = vector.broadcast %cst_19 : f32 to vector<16x1xf32>
    %48 = arith.mulf %46, %47 : vector<16x1xf32>
    %49 = arith.mulf %43, %43 : vector<16x1xf32>
    %50 = arith.subf %48, %49 : vector<16x1xf32>
    %cst_20 = arith.constant 9.99999974E-6 : f32
    %51 = vector.broadcast %cst_20 : f32 to vector<16x1xf32>
    %52 = arith.addf %50, %51 : vector<16x1xf32>
    %53 = math.rsqrt %52 : vector<16x1xf32>
    %54 = vector.broadcast %43 : vector<16x1xf32> to vector<16x128xf32>
    %55 = arith.subf %39, %54 : vector<16x128xf32>
    %56 = vector.broadcast %53 : vector<16x1xf32> to vector<16x128xf32>
    %57 = arith.mulf %55, %56 : vector<16x128xf32>
    %c4 = arith.constant 4 : index
    %c0_21 = arith.constant 0 : index
    %58 = vector.load %arg3[%c4, %c0_21] : memref<16x128xf32, #tpu.memory_space<vmem>>, vector<1x128xf32>
    %59 = vector.broadcast %58 : vector<1x128xf32> to vector<16x128xf32>
    %60 = arith.mulf %57, %59 : vector<16x128xf32>
    %c5 = arith.constant 5 : index
    %c0_22 = arith.constant 0 : index
    %61 = vector.load %arg3[%c5, %c0_22] : memref<16x128xf32, #tpu.memory_space<vmem>>, vector<1x128xf32>
    %62 = vector.broadcast %61 : vector<1x128xf32> to vector<16x128xf32>
    %63 = arith.addf %60, %62 : vector<16x128xf32>
    %64 = vector.extract_strided_slice %63 {offsets = [0, 0], sizes = [16, 32], strides = [1, 1]} : vector<16x128xf32> to vector<16x32xf32>
    %65 = arith.truncf %64 : vector<16x32xf32> to vector<16x32xbf16>
    %c48 = arith.constant 48 : index
    %c0_23 = arith.constant 0 : index
    %66 = vector.load %arg2[%c48, %c0_23] : memref<304x128xbf16, #tpu.memory_space<vmem>>, vector<32x128xbf16>
    %cst_24 = arith.constant dense<0.000000e+00> : vector<16x128xf32>
    %67 = tpu.matmul %65, %66, %cst_24 {dimension_numbers = #tpu.dot_dimension_numbers<[1], [0], [0], [1], [0, 0, 1, 1], [], []>} : vector<16x32xbf16>, vector<32x128xbf16>, vector<16x128xf32> -> vector<16x128xf32>
    %c6 = arith.constant 6 : index
    %c0_25 = arith.constant 0 : index
    %68 = vector.load %arg3[%c6, %c0_25] : memref<16x128xf32, #tpu.memory_space<vmem>>, vector<1x128xf32>
    %69 = vector.broadcast %68 : vector<1x128xf32> to vector<16x128xf32>
    %70 = arith.addf %67, %69 : vector<16x128xf32>
    %cst_26 = arith.constant 0.000000e+00 : f32
    %71 = vector.broadcast %cst_26 : f32 to vector<16x128xf32>
    %72 = arith.maximumf %70, %71 : vector<16x128xf32>
    %73 = arith.truncf %72 : vector<16x128xf32> to vector<16x128xbf16>
    %c80 = arith.constant 80 : index
    %c0_27 = arith.constant 0 : index
    %74 = vector.load %arg2[%c80, %c0_27] : memref<304x128xbf16, #tpu.memory_space<vmem>>, vector<128x128xbf16>
    %cst_28 = arith.constant dense<0.000000e+00> : vector<16x128xf32>
    %75 = tpu.matmul %73, %74, %cst_28 {dimension_numbers = #tpu.dot_dimension_numbers<[1], [0], [0], [1], [0, 0, 1, 1], [], []>} : vector<16x128xbf16>, vector<128x128xbf16>, vector<16x128xf32> -> vector<16x128xf32>
    %c7 = arith.constant 7 : index
    %c0_29 = arith.constant 0 : index
    %76 = vector.load %arg3[%c7, %c0_29] : memref<16x128xf32, #tpu.memory_space<vmem>>, vector<1x128xf32>
    %77 = vector.broadcast %76 : vector<1x128xf32> to vector<16x128xf32>
    %78 = arith.addf %75, %77 : vector<16x128xf32>
    %79 = arith.addf %63, %78 : vector<16x128xf32>
    %cst_30 = arith.constant dense<0.000000e+00> : vector<16xf32>
    %80 = vector.multi_reduction <add>, %79, %cst_30 [1] : vector<16x128xf32> to vector<16xf32>
    %81 = vector.shape_cast %80 : vector<16xf32> to vector<16x1xf32>
    %cst_31 = arith.constant 3.125000e-02 : f32
    %82 = vector.broadcast %cst_31 : f32 to vector<16x1xf32>
    %83 = arith.mulf %81, %82 : vector<16x1xf32>
    %84 = arith.mulf %79, %79 : vector<16x128xf32>
    %cst_32 = arith.constant dense<0.000000e+00> : vector<16xf32>
    %85 = vector.multi_reduction <add>, %84, %cst_32 [1] : vector<16x128xf32> to vector<16xf32>
    %86 = vector.shape_cast %85 : vector<16xf32> to vector<16x1xf32>
    %cst_33 = arith.constant 3.125000e-02 : f32
    %87 = vector.broadcast %cst_33 : f32 to vector<16x1xf32>
    %88 = arith.mulf %86, %87 : vector<16x1xf32>
    %89 = arith.mulf %83, %83 : vector<16x1xf32>
    %90 = arith.subf %88, %89 : vector<16x1xf32>
    %cst_34 = arith.constant 9.99999974E-6 : f32
    %91 = vector.broadcast %cst_34 : f32 to vector<16x1xf32>
    %92 = arith.addf %90, %91 : vector<16x1xf32>
    %93 = math.rsqrt %92 : vector<16x1xf32>
    %94 = vector.broadcast %83 : vector<16x1xf32> to vector<16x128xf32>
    %95 = arith.subf %79, %94 : vector<16x128xf32>
    %96 = vector.broadcast %93 : vector<16x1xf32> to vector<16x128xf32>
    %97 = arith.mulf %95, %96 : vector<16x128xf32>
    %98 = vector.extract_strided_slice %97 {offsets = [0, 0], sizes = [16, 32], strides = [1, 1]} : vector<16x128xf32> to vector<16x32xf32>
    %99 = arith.truncf %98 : vector<16x32xf32> to vector<16x32xbf16>
    %c208 = arith.constant 208 : index
    %c0_35 = arith.constant 0 : index
    %100 = vector.load %arg2[%c208, %c0_35] : memref<304x128xbf16, #tpu.memory_space<vmem>>, vector<32x128xbf16>
    %cst_36 = arith.constant dense<0.000000e+00> : vector<16x128xf32>
    %101 = tpu.matmul %99, %100, %cst_36 {dimension_numbers = #tpu.dot_dimension_numbers<[1], [0], [0], [1], [0, 0, 1, 1], [], []>} : vector<16x32xbf16>, vector<32x128xbf16>, vector<16x128xf32> -> vector<16x128xf32>
    %c8 = arith.constant 8 : index
    %c0_37 = arith.constant 0 : index
    %102 = vector.load %arg3[%c8, %c0_37] : memref<16x128xf32, #tpu.memory_space<vmem>>, vector<1x128xf32>
    %103 = vector.broadcast %102 : vector<1x128xf32> to vector<16x128xf32>
    %104 = arith.addf %101, %103 : vector<16x128xf32>
    %cst_38 = arith.constant 0.000000e+00 : f32
    %105 = vector.broadcast %cst_38 : f32 to vector<16x128xf32>
    %106 = arith.maximumf %104, %105 : vector<16x128xf32>
    %107 = vector.extract_strided_slice %106 {offsets = [0, 0], sizes = [16, 32], strides = [1, 1]} : vector<16x128xf32> to vector<16x32xf32>
    %108 = arith.truncf %107 : vector<16x32xf32> to vector<16x32xbf16>
    %c240 = arith.constant 240 : index
    %c0_39 = arith.constant 0 : index
    %109 = vector.load %arg2[%c240, %c0_39] : memref<304x128xbf16, #tpu.memory_space<vmem>>, vector<32x128xbf16>
    %cst_40 = arith.constant dense<0.000000e+00> : vector<16x128xf32>
    %110 = tpu.matmul %108, %109, %cst_40 {dimension_numbers = #tpu.dot_dimension_numbers<[1], [0], [0], [1], [0, 0, 1, 1], [], []>} : vector<16x32xbf16>, vector<32x128xbf16>, vector<16x128xf32> -> vector<16x128xf32>
    %c9 = arith.constant 9 : index
    %c0_41 = arith.constant 0 : index
    %111 = vector.load %arg3[%c9, %c0_41] : memref<16x128xf32, #tpu.memory_space<vmem>>, vector<1x128xf32>
    %112 = vector.broadcast %111 : vector<1x128xf32> to vector<16x128xf32>
    %113 = arith.addf %110, %112 : vector<16x128xf32>
    %cst_42 = arith.constant 0.000000e+00 : f32
    %114 = vector.broadcast %cst_42 : f32 to vector<16x128xf32>
    %115 = arith.maximumf %113, %114 : vector<16x128xf32>
    %116 = vector.extract_strided_slice %115 {offsets = [0, 0], sizes = [16, 32], strides = [1, 1]} : vector<16x128xf32> to vector<16x32xf32>
    %117 = arith.truncf %116 : vector<16x32xf32> to vector<16x32xbf16>
    %c272 = arith.constant 272 : index
    %c0_43 = arith.constant 0 : index
    %118 = vector.load %arg2[%c272, %c0_43] : memref<304x128xbf16, #tpu.memory_space<vmem>>, vector<32x128xbf16>
    %cst_44 = arith.constant dense<0.000000e+00> : vector<16x128xf32>
    %119 = tpu.matmul %117, %118, %cst_44 {dimension_numbers = #tpu.dot_dimension_numbers<[1], [0], [0], [1], [0, 0, 1, 1], [], []>} : vector<16x32xbf16>, vector<32x128xbf16>, vector<16x128xf32> -> vector<16x128xf32>
    %c10 = arith.constant 10 : index
    %c0_45 = arith.constant 0 : index
    %120 = vector.load %arg3[%c10, %c0_45] : memref<16x128xf32, #tpu.memory_space<vmem>>, vector<1x128xf32>
    %121 = vector.broadcast %120 : vector<1x128xf32> to vector<16x128xf32>
    %122 = arith.addf %119, %121 : vector<16x128xf32>
    %123 = vector.extract_strided_slice %122 {offsets = [0, 0], sizes = [16, 4], strides = [1, 1]} : vector<16x128xf32> to vector<16x4xf32>
    %c0_46 = arith.constant 0 : index
    %c0_47 = arith.constant 0 : index
    %124 = vector.load %arg4[%c0_46, %c0_47] : memref<16x4xf32, #tpu.memory_space<vmem>>, vector<16x4xf32>
    tpu.vector_store %arg4[%c0_46, %c0_47], %123 {strides = array<i32>} : memref<16x4xf32, #tpu.memory_space<vmem>>, vector<16x4xf32>,
    return
  }
  func.func @transform_0(%arg0: i32) -> (i32, i32) {
    %c0_i32 = arith.constant 0 : i32
    %c0_i32_0 = arith.constant 0 : i32
    return %arg0, %c0_i32 : i32, i32
  }
  func.func @transform_1(%arg0: i32) -> (i32, i32) {
    %c0_i32 = arith.constant 0 : i32
    %c0_i32_0 = arith.constant 0 : i32
    %c0_i32_1 = arith.constant 0 : i32
    return %c0_i32, %c0_i32_0 : i32, i32
  }
  func.func @transform_2(%arg0: i32) -> (i32, i32) {
    %c0_i32 = arith.constant 0 : i32
    %c0_i32_0 = arith.constant 0 : i32
    %c0_i32_1 = arith.constant 0 : i32
    return %c0_i32, %c0_i32_0 : i32, i32
  }
  func.func @transform_3(%arg0: i32) -> (i32, i32) {
    %c0_i32 = arith.constant 0 : i32
    %c0_i32_0 = arith.constant 0 : i32
    return %arg0, %c0_i32 : i32, i32
  }
}

</mosaic_0001>

<bundles_post_ra>
// kernel: centralized_critic_forward.1
= control target key start
LH: loop header
LB: loop body
LE: loop exit
PB: predicated region body
PF: predicated region fallthrough
CT: control target
= control target key end

     0   :  { %8 = vsyncpa [#allocation3], 0  ;;  %s850_s12 = smov [#allocation2]   ;;  %s958_s0 = inlined_call_operand.vmem [shape: bf16[16,16], index: 0, kind: input, shape index: {}]   ;;  %s959_s1 = inlined_call_operand.hbm [shape: bf16[304,128], index: 1, kind: input, shape index: {}]   ;;  %s960_s2 = inlined_call_operand.vmem [shape: f32[16,128], index: 2, kind: input, shape index: {}]   ;;  %s961_s3 = inlined_call_operand.vmem [shape: f32[16,4], index: 3, kind: output, shape index: {}]  }
   0x1   :  { %s16_s13 = sshll.u32 %s850_s12, 4  ;;  %s17_s13 = int_to_ptr.vmem [resolvable:$true] %s16_s13 }
   0x2   :  { %s836_s14 = scalar_lea.vmem %s17_s13, 2432  ;;  %p841_p1 = scmp.lt.s32.totalorder %s17_s13, %s17_s13 }
   0x3   :  { %p837_p0 = scmp.ne.s32.totalorder %s17_s13, %s836_s14  ;;  %p842_p2 = scmp.lt.s32.totalorder %s836_s14, %s836_s14 }
   0x5   :  { %p843_p3 = por %p842_p2, %p841_p1 }
   0x7   :  { %p844_p4 = pnand %p843_p3, %p837_p0 }
   0x9   :  { %847 = shalt.err (!%p844_p4)
}
   0xa   :  { %s851_s15 = smov 64   ;;  %s852_s16 = smov 4  }
   0xb   :  { %22 = dma.hbm_to_vmem [thread:$0]  %s959_s1, 2432, %s17_s13, [#allocation3], %s851_s15, %s851_s15, %s852_s16  }
   0xc   :  { %848 = dma.done.wait [#allocation3], 2432  }
   0xd   :  { %849 = vsyncadd [#allocation3], 4294964864  ;;  %v853_v0 = vmov 0.0   ;;  %vm854_vm0 = vmmov 0   ;;  %v796_v1 = vld [vmem:[#allocation2] sm:$0xff]   ;;  %vm49_vm1 = vcmask 130048  }
   0xe   :  { %725 = vmatprep.subr.bf16.mxu0 %v853_v0  ;;  %727 = vmatprep.mubr.msk.bf16.mxu0 %vm854_vm0, %v853_v0  ;;  %v797_v2 = vld [vmem:[%s958_s0] sm:$0xff]   ;;  %v798_v14 = vld [vmem:[#allocation2 + $0x10] sm:$0xff]   ;;  %v799_v15 = vld [vmem:[#allocation2 + $0x8] sm:$0xff]   ;;  %vm158_vm2 = vcmask 261120   ;;  %vm654_vm3 = vcmask 31744  }
   0xf   :  { %731 = vmatprep.subr.bf16.mxu1 %v853_v0  ;;  %735 = vmatprep.mubr.msk.bf16.mxu1 %vm854_vm0, %v853_v0  ;;  %v662_v3 = vld [vmem:[%s960_s2] ss:$0 sm:$0xff]  ;;  %v666_v33 = vld [vmem:[%s960_s2 + $0x1] ss:$0 sm:$0xff]  ;;  %v667_v38 = vld [vmem:[%s960_s2 + $0x2] ss:$0 sm:$0xff] }
  0x10   :  { %726 = vmatpush3.bf16.msra.mxu0 %v796_v1  ;;  %732 = vmatpush3.bf16.msra.mxu1 %v798_v14  ;;  %v668_v43 = vld [vmem:[%s960_s2 + $0x3] ss:$0 sm:$0xff]  ;;  %v801_v55 = vld [vmem:[#allocation2 + $0x18] sm:$0xff]   ;;  %v804_v58 = vld [vmem:[#allocation2 + $0x50] sm:$0xff]  }
  0x11   :  { %739 = vmatprep.subr.bf16.mxu0 %v853_v0  ;;  %733 = vmatprep.subr.bf16.mxu1 %v853_v0  ;;  %v800_v54 = vld [vmem:[#allocation2 + $0x20] sm:$0xff]   ;;  %v803_v57 = vld [vmem:[#allocation2 + $0x58] sm:$0xff]   ;;  %v805_v59 = vld [vmem:[#allocation2 + $0x48] sm:$0xff]  }
  0x12   :  { %v802_v56 = vld [vmem:[#allocation2 + $0x60] sm:$0xff]  }
  0x13   :  { %728 = vmatmul.mubr.msk.bf16.vlgmr.msra.gmra.mxu0 %vm49_vm1, %v797_v2  ;;  %v806_v60 = vld [vmem:[#allocation2 + $0x40] sm:$0xff]  }
  0x14   :  { %743 = vmatprep.mubr.msk.bf16.mxu0 %vm854_vm0, %v853_v0  ;;  %734 = vmatpush3.bf16.msra.mxu1 %v799_v15  ;;  %v672_v15 = vld [vmem:[%s960_s2 + $0x4] ss:$0 sm:$0xff] }
  0x15   :  { %747 = vmatprep.subr.bf16.mxu1 %v853_v0  ;;  %740 = vmatpush3.bf16.msra.mxu0 %v800_v54 }
  0x16   :  { %741 = vmatprep.subr.bf16.mxu0 %v853_v0 }
  0x19   :  { %742 = vmatpush3.bf16.msra.mxu0 %v801_v55 }
  0x1a   :  { %767 = vmatprep.subr.bf16.mxu0 %v853_v0 }
  0xd3   :  { %v87_v4 = vpop.f32.mrf.mxu0 }
  0xd4   :  { %v88_v5 = vadd.f32 %v662_v3, %v87_v4 }
  0xd5   :  { %v729_v6 = vpop.f32.mrf.mxu0 }
  0xd6   :  { %v94_v7 = vmax.f32 %v88_v5, 0.0 }
  0xd7   :  { %v90_v8 = vpop.f32.mrf.mxu0 }
  0xd8   :  { %v91_v9 = vadd.f32 %v662_v3, %v90_v8  ;;  %96 = vadd.xlane.f32.xlu0 %v94_v7  ;;  %v102_v10 = vmul.f32 %v94_v7, %v94_v7 }
  0xd9   :  { %v730_v11 = vpop.f32.mrf.mxu0 }
  0xda   :  { %v95_v12 = vmax.f32 %v91_v9, 0.0  ;;  %104 = vadd.xlane.f32.xlu1 %v102_v10 }
  0xdc   :  { %98 = vadd.xlane.f32.xlu0 %v95_v12  ;;  %v103_v13 = vmul.f32 %v95_v12, %v95_v12 }
  0xde   :  { %106 = vadd.xlane.f32.xlu1 %v103_v13 }
 0x161   :  { %v97_v16 = vpop.xlane.xlu0 %96 }
 0x162   :  { %v100_v17 = vmul.f32 0.03125, %v97_v16 }
 0x163   :  { %v105_v18 = vpop.xlane.xlu1 %104 }
 0x164   :  { %v110_v19 = vmul.f32 %v100_v17, %v100_v17  ;;  %v108_v20 = vmul.f32 0.03125, %v105_v18  ;;  %v118_v30 = vsub.f32 %v94_v7, %v100_v17 }
 0x165   :  { %v99_v21 = vpop.xlane.xlu0 %98 }
 0x166   :  { %v112_v22 = vsub.f32 %v108_v20, %v110_v19  ;;  %v101_v23 = vmul.f32 0.03125, %v99_v21  ;;  %v673_v20 = vld [vmem:[%s960_s2 + $0x5] ss:$0 sm:$0xff] }
 0x167   :  { %v107_v24 = vpop.xlane.xlu1 %106 }
 0x168   :  { %v114_v25 = vadd.f32 1e-05, %v112_v22  ;;  %v111_v26 = vmul.f32 %v101_v23, %v101_v23  ;;  %v109_v27 = vmul.f32 0.03125, %v107_v24  ;;  %v119_v34 = vsub.f32 %v95_v12, %v101_v23 }
 0x16a   :  { %816 = vrsqrt.f32 %v114_v25  ;;  %v113_v28 = vsub.f32 %v109_v27, %v111_v26  ;;  %v807_v25 = vld [vmem:[#allocation2 + $0x38] sm:$0xff]   ;;  %v808_v26 = vld [vmem:[#allocation2 + $0x30] sm:$0xff]   ;;  %v809_v27 = vld [vmem:[#allocation2 + $0x28] sm:$0xff]  }
 0x16c   :  { %v115_v29 = vadd.f32 1e-05, %v113_v28  ;;  %v674_v28 = vld [vmem:[%s960_s2 + $0x6] ss:$0 sm:$0xff] }
 0x16e   :  { %818 = vrsqrt.f32 %v115_v29 }
 0x177   :  { %v817_v31 = vpop.eup %816 }
 0x178   :  { %v120_v32 = vmul.f32 %v817_v31, %v118_v30 }
 0x17a   :  { %v127_v37 = vmul.f32 %v666_v33, %v120_v32 }
 0x17b   :  { %v819_v35 = vpop.eup %818 }
 0x17c   :  { %v121_v36 = vmul.f32 %v819_v35, %v119_v34  ;;  %v134_v40 = vadd.f32 %v667_v38, %v127_v37 }
 0x17e   :  { %v128_v39 = vmul.f32 %v666_v33, %v121_v36 }
 0x180   :  { %v135_v41 = vadd.f32 %v667_v38, %v128_v39  ;;  %v678_v38 = vld [vmem:[%s960_s2 + $0x7] ss:$0 sm:$0xff] }
 0x182   :  { %v136_v42 = vpack.c.bf16 %v135_v41, %v134_v40 }
 0x184   :  { %736 = vmatmul.mubr.msk.bf16.vlgmr.msra.gmra.mxu1 %vm158_vm2, %v136_v42 }
 0x185   :  { %763 = vmatprep.mubr.msk.bf16.mxu1 %vm854_vm0, %v853_v0  ;;  %748 = vmatpush3.bf16.msra.mxu1 %v802_v56 }
 0x186   :  { %749 = vmatprep.subr.bf16.mxu1 %v853_v0 }
 0x189   :  { %750 = vmatpush3.bf16.msra.mxu1 %v803_v57 }
 0x18a   :  { %751 = vmatprep.subr.bf16.mxu1 %v853_v0 }
 0x18d   :  { %752 = vmatpush3.bf16.msra.mxu1 %v804_v58 }
 0x18e   :  { %753 = vmatprep.subr.bf16.mxu1 %v853_v0 }
 0x191   :  { %754 = vmatpush3.bf16.msra.mxu1 %v805_v59 }
 0x192   :  { %755 = vmatprep.subr.bf16.mxu1 %v853_v0 }
 0x195   :  { %756 = vmatpush3.bf16.msra.mxu1 %v806_v60 }
 0x196   :  { %757 = vmatprep.subr.bf16.mxu1 %v853_v0 }
 0x199   :  { %758 = vmatpush3.bf16.msra.mxu1 %v807_v25 }
 0x19a   :  { %759 = vmatprep.subr.bf16.mxu1 %v853_v0 }
 0x19d   :  { %760 = vmatpush3.bf16.msra.mxu1 %v808_v26 }
 0x19e   :  { %761 = vmatprep.subr.bf16.mxu1 %v853_v0 }
 0x1a1   :  { %762 = vmatpush3.bf16.msra.mxu1 %v809_v27 }
 0x244   :  { %v196_v44 = vpop.f32.mrf.mxu1 }
 0x245   :  { %v197_v45 = vadd.f32 %v668_v43, %v196_v44 }
 0x246   :  { %v737_v46 = vpop.f32.mrf.mxu1 }
 0x247   :  { %v203_v47 = vadd.f32 %v197_v45, %v134_v40 }
 0x248   :  { %v199_v48 = vpop.f32.mrf.mxu1 }
 0x249   :  { %v200_v49 = vadd.f32 %v668_v43, %v199_v48  ;;  %205 = vadd.xlane.f32.xlu0 %v203_v47  ;;  %v211_v52 = vmul.f32 %v203_v47, %v203_v47 }
 0x24a   :  { %v738_v50 = vpop.f32.mrf.mxu1 }
 0x24b   :  { %v204_v51 = vadd.f32 %v200_v49, %v135_v41  ;;  %v810_v49 = vld [vmem:[#allocation2 + $0x70] sm:$0xff]   ;;  %v811_v50 = vld [vmem:[#allocation2 + $0x68] sm:$0xff]  }
 0x24d   :  { %213 = vadd.xlane.f32.xlu0 %v211_v52  ;;  %207 = vadd.xlane.f32.xlu1 %v204_v51  ;;  %v212_v53 = vmul.f32 %v204_v51, %v204_v51 }
 0x251   :  { %215 = vadd.xlane.f32.xlu1 %v212_v53 }
 0x2d2   :  { %v206_v61 = vpop.xlane.xlu0 %205 }
 0x2d3   :  { %v209_v62 = vmul.f32 0.03125, %v206_v61 }
 0x2d5   :  { %v219_v2 = vmul.f32 %v209_v62, %v209_v62  ;;  %v227_v12 = vsub.f32 %v203_v47, %v209_v62 }
 0x2d6   :  { %v214_v63 = vpop.xlane.xlu0 %213  ;;  %v208_v1 = vpop.xlane.xlu1 %207 }
 0x2d7   :  { %v217_v3 = vmul.f32 0.03125, %v214_v63  ;;  %v210_v4 = vmul.f32 0.03125, %v208_v1 }
 0x2d9   :  { %v221_v5 = vsub.f32 %v217_v3, %v219_v2  ;;  %v220_v8 = vmul.f32 %v210_v4, %v210_v4  ;;  %v228_v16 = vsub.f32 %v204_v51, %v210_v4 }
 0x2da   :  { %v216_v6 = vpop.xlane.xlu1 %215 }
 0x2db   :  { %v223_v7 = vadd.f32 1e-05, %v221_v5  ;;  %v218_v9 = vmul.f32 0.03125, %v216_v6 }
 0x2dd   :  { %820 = vrsqrt.f32 %v223_v7  ;;  %v222_v10 = vsub.f32 %v218_v9, %v220_v8  ;;  %v812_v9 = vld [vmem:[#allocation2 + $0x80] sm:$0xff]  }
 0x2df   :  { %v224_v11 = vadd.f32 1e-05, %v222_v10  ;;  %v813_v10 = vld [vmem:[#allocation2 + $0x78] sm:$0xff]  }
 0x2e1   :  { %822 = vrsqrt.f32 %v224_v11  ;;  %v687_v11 = vld [vmem:[%s960_s2 + $0x8] ss:$0 sm:$0xff] }
 0x2ea   :  { %v821_v13 = vpop.eup %820 }
 0x2eb   :  { %v229_v14 = vmul.f32 %v821_v13, %v227_v12 }
 0x2ed   :  { %v236_v19 = vmul.f32 %v672_v15, %v229_v14 }
 0x2ee   :  { %v823_v17 = vpop.eup %822 }
 0x2ef   :  { %v230_v18 = vmul.f32 %v823_v17, %v228_v16  ;;  %v243_v22 = vadd.f32 %v673_v20, %v236_v19 }
 0x2f1   :  { %v237_v21 = vmul.f32 %v672_v15, %v230_v18 }
 0x2f3   :  { %v244_v23 = vadd.f32 %v673_v20, %v237_v21  ;;  %v814_v21 = vld [vmem:[#allocation2 + $0x90] sm:$0xff]  }
 0x2f5   :  { %v245_v24 = vpack.c.bf16 %v244_v23, %v243_v22 }
 0x2f7   :  { %744 = vmatmul.mubr.msk.bf16.vlgmr.msra.gmra.mxu0 %vm158_vm2, %v245_v24 }
 0x2f8   :  { %771 = vmatprep.mubr.msk.bf16.mxu0 %vm854_vm0, %v853_v0  ;;  %768 = vmatpush3.bf16.msra.mxu0 %v810_v49 }
 0x2f9   :  { %769 = vmatprep.subr.bf16.mxu0 %v853_v0 }
 0x2fc   :  { %770 = vmatpush3.bf16.msra.mxu0 %v811_v50 }
 0x2fd   :  { %775 = vmatprep.subr.bf16.mxu0 %v853_v0 }
 0x3b7   :  { %v304_v29 = vpop.f32.mrf.mxu0 }
 0x3b8   :  { %v305_v31 = vadd.f32 %v674_v28, %v304_v29 }
 0x3b9   :  { %v745_v30 = vpop.f32.mrf.mxu0 }
 0x3ba   :  { %v311_v35 = vmax.f32 %v305_v31, 0.0 }
 0x3bb   :  { %v307_v32 = vpop.f32.mrf.mxu0 }
 0x3bc   :  { %v308_v33 = vadd.f32 %v674_v28, %v307_v32 }
 0x3bd   :  { %v746_v34 = vpop.f32.mrf.mxu0 }
 0x3be   :  { %v312_v36 = vmax.f32 %v308_v33, 0.0 }
 0x3c0   :  { %v313_v37 = vpack.c.bf16 %v312_v36, %v311_v35 }
 0x3c2   :  { %764 = vmatmul.mubr.bf16.vlgmr.msra.gmra.mxu1 %v313_v37 }
 0x482   :  { %v417_v39 = vpop.f32.mrf.mxu1 }
 0x483   :  { %v418_v40 = vadd.f32 %v678_v38, %v417_v39 }
 0x484   :  { %v765_v41 = vpop.f32.mrf.mxu1 }
 0x485   :  { %v424_v42 = vadd.f32 %v418_v40, %v243_v22  ;;  %v815_v22 = vld [vmem:[#allocation2 + $0x88] sm:$0xff]  }
 0x486   :  { %v420_v43 = vpop.f32.mrf.mxu1 }
 0x487   :  { %v421_v44 = vadd.f32 %v678_v38, %v420_v43  ;;  %426 = vadd.xlane.f32.xlu0 %v424_v42  ;;  %v432_v47 = vmul.f32 %v424_v42, %v424_v42 }
 0x488   :  { %v766_v45 = vpop.f32.mrf.mxu1 }
 0x489   :  { %v425_v46 = vadd.f32 %v421_v44, %v244_v23  ;;  %v691_v23 = vld [vmem:[%s960_s2 + $0x9] ss:$0 sm:$0xff] }
 0x48b   :  { %434 = vadd.xlane.f32.xlu0 %v432_v47  ;;  %428 = vadd.xlane.f32.xlu1 %v425_v46  ;;  %v433_v48 = vmul.f32 %v425_v46, %v425_v46 }
 0x48f   :  { %436 = vadd.xlane.f32.xlu1 %v433_v48 }
 0x510   :  { %v427_v51 = vpop.xlane.xlu0 %426 }
 0x511   :  { %v430_v52 = vmul.f32 0.03125, %v427_v51 }
 0x513   :  { %v440_v55 = vmul.f32 %v430_v52, %v430_v52  ;;  %v448_v3 = vsub.f32 %v424_v42, %v430_v52 }
 0x514   :  { %v435_v53 = vpop.xlane.xlu0 %434  ;;  %v429_v54 = vpop.xlane.xlu1 %428 }
 0x515   :  { %v438_v56 = vmul.f32 0.03125, %v435_v53  ;;  %v431_v57 = vmul.f32 0.03125, %v429_v54 }
 0x517   :  { %v442_v58 = vsub.f32 %v438_v56, %v440_v55  ;;  %v441_v61 = vmul.f32 %v431_v57, %v431_v57  ;;  %v449_v4 = vsub.f32 %v425_v46, %v431_v57 }
 0x518   :  { %v437_v59 = vpop.xlane.xlu1 %436 }
 0x519   :  { %v444_v60 = vadd.f32 1e-05, %v442_v58  ;;  %v439_v62 = vmul.f32 0.03125, %v437_v59 }
 0x51b   :  { %v443_v63 = vsub.f32 %v439_v62, %v441_v61  ;;  %824 = vrsqrt.f32 %v444_v60 }
 0x51d   :  { %v445_v1 = vadd.f32 1e-05, %v443_v63 }
 0x51f   :  { %826 = vrsqrt.f32 %v445_v1 }
 0x528   :  { %v825_v2 = vpop.eup %824 }
 0x529   :  { %v450_v6 = vmul.f32 %v825_v2, %v448_v3 }
 0x52c   :  { %v827_v5 = vpop.eup %826 }
 0x52d   :  { %v451_v7 = vmul.f32 %v827_v5, %v449_v4 }
 0x52f   :  { %v452_v8 = vpack.c.bf16 %v451_v7, %v450_v6 }
 0x531   :  { %772 = vmatmul.mubr.msk.bf16.vlgmr.msra.gmra.mxu0 %vm158_vm2, %v452_v8 }
 0x532   :  { %779 = vmatprep.mubr.msk.bf16.mxu0 %vm854_vm0, %v853_v0  ;;  %776 = vmatpush3.bf16.msra.mxu0 %v812_v9 }
 0x533   :  { %777 = vmatprep.subr.bf16.mxu0 %v853_v0 }
 0x536   :  { %778 = vmatpush3.bf16.msra.mxu0 %v813_v10 }
 0x537   :  { %783 = vmatprep.subr.bf16.mxu0 %v853_v0 }
 0x5f1   :  { %v511_v12 = vpop.f32.mrf.mxu0 }
 0x5f2   :  { %v512_v14 = vadd.f32 %v687_v11, %v511_v12 }
 0x5f3   :  { %v773_v13 = vpop.f32.mrf.mxu0 }
 0x5f4   :  { %v518_v18 = vmax.f32 %v512_v14, 0.0 }
 0x5f5   :  { %v514_v15 = vpop.f32.mrf.mxu0 }
 0x5f6   :  { %v515_v16 = vadd.f32 %v687_v11, %v514_v15 }
 0x5f7   :  { %v774_v17 = vpop.f32.mrf.mxu0 }
 0x5f8   :  { %v519_v19 = vmax.f32 %v515_v16, 0.0 }
 0x5fa   :  { %v520_v20 = vpack.c.bf16 %v519_v19, %v518_v18 }
 0x5fc   :  { %780 = vmatmul.mubr.msk.bf16.vlgmr.msra.gmra.mxu0 %vm158_vm2, %v520_v20 }
 0x5fd   :  { %787 = vmatprep.mubr.msk.bf16.mxu0 %vm854_vm0, %v853_v0  ;;  %784 = vmatpush3.bf16.msra.mxu0 %v814_v21 }
 0x5fe   :  { %785 = vmatprep.subr.bf16.mxu0 %v853_v0  ;;  %v695_v0 = vld [vmem:[%s960_s2 + $0xa] ss:$0 sm:$0xff] }
 0x601   :  { %786 = vmatpush3.bf16.msra.mxu0 %v815_v22 }
 0x6bc   :  { %v579_v24 = vpop.f32.mrf.mxu0 }
 0x6bd   :  { %v580_v26 = vadd.f32 %v691_v23, %v579_v24 }
 0x6be   :  { %v781_v25 = vpop.f32.mrf.mxu0 }
 0x6bf   :  { %v586_v30 = vmax.f32 %v580_v26, 0.0 }
 0x6c0   :  { %v582_v27 = vpop.f32.mrf.mxu0 }
 0x6c1   :  { %v583_v28 = vadd.f32 %v691_v23, %v582_v27 }
 0x6c2   :  { %v782_v29 = vpop.f32.mrf.mxu0 }
 0x6c3   :  { %v587_v31 = vmax.f32 %v583_v28, 0.0 }
 0x6c5   :  { %v588_v32 = vpack.c.bf16 %v587_v31, %v586_v30 }
 0x6c7   :  { %788 = vmatmul.mubr.msk.bf16.vlgmr.msra.gmra.mxu0 %vm158_vm2, %v588_v32 }
 0x787   :  { %v647_v33 = vpop.f32.mrf.mxu0 }
 0x788   :  { %v648_v34 = vadd.f32 %v695_v0, %v647_v33 }
 0x789   :  { %v789_v35 = vpop.f32.mrf.mxu0 }
 0x78a   :  { %655 = vst.msk [vmem:[%s961_s3] sm:$0xff] %vm654_vm3, %v648_v34 }
 0x78b   :  { %v650_v36 = vpop.f32.mrf.mxu0 }
 0x78c   :  { %v651_v37 = vadd.f32 %v695_v0, %v650_v36 }
 0x78d   :  { %v790_v38 = vpop.f32.mrf.mxu0 }
 0x78e   :  { %656 = vst.msk [vmem:[%s961_s3 + $0x8] sm:$0xff] %vm654_vm3, %v651_v37 }
 0x78f   :  { %661 = vsyncpa [#allocation3], 1 }

</bundles_post_ra>
